<compile_context>
chip_gen: v5e
topology: v5e:2x2
jax: 0.10.0
libtpu: 0.0.40
codegen_flags: <defaults>
</compile_context>

<pallas_src>
import functools

import jax
import jax.numpy as jnp
from jax.experimental import pallas as pl
from jax.experimental.pallas import tpu as pltpu

_MIB = 1 << 20
_WEIGHT_RESIDENT_BUDGET = 24 * _MIB   # keep full (w1, w2) resident below this
_WEIGHT_CHUNK_BUDGET = 8 * _MIB       # per hidden chunk when tiling hidden dim
_STREAM_BUDGET = 16 * _MIB            # budget for x/out/acc/h tiles
_MAX_BATCH_TILE = 2048


def _round_up(x: int, m: int) -> int:
    return ((x + m - 1) // m) * m


def _cdiv(a: int, b: int) -> int:
    return -(-a // b)


def _readout_kernel(x_ref, w1_ref, b1_ref, w2_ref, b2_ref, o_ref, acc_ref):
    """One (batch_tile, hidden_chunk) grid step of relu(x@w1+b1)@w2+b2."""
    h_idx = pl.program_id(1)

    @pl.when(h_idx == 0)
    def _():
        acc_ref[...] = jnp.zeros_like(acc_ref)

    cdt = w1_ref.dtype
    # hidden chunk = relu(x @ w1[:, chunk] + b1[chunk]): MXU matmul (bf16 in,
    # f32 accumulate), bias + ReLU on the f32 accumulator (VPU).
    x = x_ref[...].astype(cdt)                      # in-kernel cast (no wrapper copy)
    h = jnp.dot(x, w1_ref[...], preferred_element_type=jnp.float32)
    h = jnp.maximum(h + b1_ref[...], 0.0)
    # partial output += h_chunk @ w2[chunk, :], f32 accumulation in scratch.
    acc_ref[...] += jnp.dot(h.astype(cdt), w2_ref[...],
                            preferred_element_type=jnp.float32)

    @pl.when(h_idx == pl.num_programs(1) - 1)
    def _():
        o_ref[...] = (acc_ref[...] + b2_ref[...]).astype(o_ref.dtype)


def prepare_params(w1, b1, w2, b2, *, compute_dtype=jnp.bfloat16, max_hid_tile=None):
    """One-time lane-dense padding + cast of the readout params.

    w1: (in, hid), b1: (1, hid) or (hid,), w2: (hid, out), b2: (1, out) or (out,).
    Returns ((w1p, b1p, w2p, b2p), meta) where meta has static 'out_size', 'hid_tile'.
    """
    in_size, hid_size = w1.shape
    out_size = w2.shape[1]
    cdt = jnp.dtype(compute_dtype)
    itemsize = cdt.itemsize

    in_p = _round_up(in_size, 128)
    out_p = _round_up(out_size, 128)
    hid_128 = _round_up(hid_size, 128)

    # Pick the hidden tile: full hidden if the weights fit the resident budget,
    # otherwise the biggest 128-multiple chunk under the per-chunk budget.
    if (in_p + out_p) * hid_128 * itemsize <= _WEIGHT_RESIDENT_BUDGET:
        hid_tile = hid_128
    else:
        hid_tile = (_WEIGHT_CHUNK_BUDGET // ((in_p + out_p) * itemsize)) // 128 * 128
        hid_tile = int(max(128, min(hid_tile, hid_128)))
    if max_hid_tile is not None:
        hid_tile = int(max(128, min(hid_tile, _round_up(max_hid_tile, 128))))
    hid_p = _round_up(hid_128, hid_tile)

    b1 = jnp.asarray(b1).reshape(1, hid_size)
    b2 = jnp.asarray(b2).reshape(1, out_size)
    w1p = jnp.zeros((in_p, hid_p), cdt).at[:in_size, :hid_size].set(
        jnp.asarray(w1).astype(cdt))
    b1p = jnp.zeros((1, hid_p), jnp.float32).at[:, :hid_size].set(
        b1.astype(jnp.float32))
    w2p = jnp.zeros((hid_p, out_p), cdt).at[:hid_size, :out_size].set(
        jnp.asarray(w2).astype(cdt))
    b2p = jnp.zeros((1, out_p), jnp.float32).at[:, :out_size].set(
        b2.astype(jnp.float32))
    return (w1p, b1p, w2p, b2p), {"out_size": int(out_size), "hid_tile": int(hid_tile)}


@functools.partial(
    jax.jit, static_argnames=("out_size", "hid_tile", "batch_tile", "out_dtype"))
def readout_network(x, w1p, b1p, w2p, b2p, *, out_size, hid_tile=None,
                    batch_tile=None, out_dtype=None):
    """x: (B, in_size); params pre-padded by prepare_params()."""
    B, in_size = x.shape
    in_p, hid_p = w1p.shape
    out_p = w2p.shape[1]
    cdt = w1p.dtype
    cdt_itemsize = jnp.dtype(cdt).itemsize
    out_dtype = x.dtype if out_dtype is None else jnp.dtype(out_dtype)
    out_itemsize = jnp.dtype(out_dtype).itemsize

    if hid_tile is None:
        hid_tile = hid_p
    assert hid_p % hid_tile == 0 and hid_tile % 128 == 0, (hid_p, hid_tile)
    grid_h = hid_p // hid_tile

    # --- x: pad the feature dim (and cast to bf16, halving the write) only when
    #     in_size is not already lane-aligned; otherwise zero-copy passthrough. ---
    if in_size != in_p:
        xp = jnp.zeros((B, in_p), cdt).at[:, :in_size].set(x.astype(cdt))
    else:
        xp = x
    x_itemsize = jnp.dtype(xp.dtype).itemsize

    # --- batch tile: sized from a VMEM stream budget; no batch padding (the
    #     ragged boundary block is masked by Pallas). ---
    sub = 8 if x_itemsize >= 4 else (16 if x_itemsize == 2 else 32)
    per_row_bytes = (2 * in_p * x_itemsize + 2 * out_p * out_itemsize
                     + out_p * 4 + 2 * hid_tile * 4)
    tb_cap = _STREAM_BUDGET // per_row_bytes
    if batch_tile is not None:
        tb_cap = min(tb_cap, batch_tile)
    tb_cap = int(max(sub, min(_MAX_BATCH_TILE, tb_cap)) // sub * sub)

    if B <= tb_cap:
        if B >= 256:
            TB = _round_up(_cdiv(B, 2), sub)   # >=2 steps so v7x megacore uses both TCs
        else:
            TB = B                             # single full-dim block (always legal)
    else:
        nsteps = _cdiv(B, tb_cap)
        TB = _round_up(_cdiv(B, nsteps), sub)
    grid_b = _cdiv(B, TB)

    # --- VMEM footprint / limit. Resident (constant index_map) operands are
    #     single-buffered; chunked weights keep default double-buffering. ---
    w_bufs = 1 if grid_h == 1 else 2
    footprint = (
        w_bufs * (in_p * hid_tile + hid_tile * out_p) * cdt_itemsize   # w1, w2
        + w_bufs * 8 * hid_tile * 4 + 8 * out_p * 4                    # b1, b2 (f32)
        + 2 * TB * in_p * x_itemsize                                   # x (double-buffered)
        + 2 * TB * out_p * out_itemsize                                # out (double-buffered)
        + TB * out_p * 4                                               # f32 accumulator
        + 2 * TB * hid_tile * 4)                                       # f32 h intermediate
    vmem_limit = int(min(max(footprint * 5 // 4 + 2 * _MIB, 32 * _MIB), 100 * _MIB))

    def _wspec(shape, index_map):
        # Constant-index operands: single buffer (second pipeline buffer is dead VMEM).
        if grid_h == 1:
            return pl.BlockSpec(shape, index_map, pipeline_mode=pl.Buffered(1))
        return pl.BlockSpec(shape, index_map)

    weight_bytes = (in_p * hid_p + hid_p * out_p) * cdt_itemsize
    if grid_h > 1:
        weight_bytes *= grid_b   # chunked weights are re-streamed per batch tile
    flops = 2 * B * hid_p * (in_p + out_p)
    bytes_accessed = int(B * in_p * x_itemsize + weight_bytes
                         + hid_p * 4 + out_p * 4 + B * out_p * out_itemsize)

    out = pl.pallas_call(
        _readout_kernel,
        out_shape=jax.ShapeDtypeStruct((B, out_p), out_dtype),
        grid=(grid_b, grid_h),
        in_specs=[
            pl.BlockSpec((TB, in_p), lambda i, h: (i, 0)),        # batch-tiled x
            _wspec((in_p, hid_tile), lambda i, h: (0, h)),        # w1 chunk
            _wspec((1, hid_tile), lambda i, h: (0, h)),           # b1 chunk (f32)
            _wspec((hid_tile, out_p), lambda i, h: (h, 0)),       # w2 chunk
            pl.BlockSpec((1, out_p), lambda i, h: (0, 0),
                         pipeline_mode=pl.Buffered(1)),           # b2 (resident)
        ],
        out_specs=pl.BlockSpec((TB, out_p), lambda i, h: (i, 0)),
        scratch_shapes=[pltpu.VMEM((TB, out_p), jnp.float32)],    # f32 accumulator
        compiler_params=pltpu.CompilerParams(
            dimension_semantics=("parallel", "arbitrary"),
            vmem_limit_bytes=vmem_limit),
        cost_estimate=pl.CostEstimate(
            flops=flops, transcendentals=0, bytes_accessed=bytes_accessed),
    )(xp, w1p, b1p, w2p, b2p)

    # Strip lane padding of the output only when there is any.
    if out_p != out_size:
        out = out[:, :out_size]
    return out


def init_params(key, input_size, hidden_size, output_size, dtype=jnp.float32):
    """Deterministic init mimicking nn.Linear's U(-1/sqrt(fan_in), 1/sqrt(fan_in))."""
    k1, k2, k3, k4 = jax.random.split(key, 4)
    lim1 = 1.0 / (input_size ** 0.5)
    lim2 = 1.0 / (hidden_size ** 0.5)
    # Stored transposed vs. PyTorch (PyTorch weight is (out_features, in_features)).
    w1 = jax.random.uniform(k1, (input_size, hidden_size), dtype, -lim1, lim1)
    b1 = jax.random.uniform(k2, (1, hidden_size), dtype, -lim1, lim1)
    w2 = jax.random.uniform(k3, (hidden_size, output_size), dtype, -lim2, lim2)
    b2 = jax.random.uniform(k4, (1, output_size), dtype, -lim2, lim2)
    return w1, b1, w2, b2


def readout_ref(x, w1, b1, w2, b2, compute_dtype=jnp.float32):
    """Pure-JAX reference of the PyTorch forward (optionally same bf16 cast pattern)."""
    xc = x.astype(compute_dtype)
    h = jnp.dot(xc, w1.astype(compute_dtype), preferred_element_type=jnp.float32)
    h = jnp.maximum(h + b1.reshape(1, -1).astype(jnp.float32), 0.0)
    out = jnp.dot(h.astype(compute_dtype), w2.astype(compute_dtype),
                  preferred_element_type=jnp.float32)
    return (out + b2.reshape(1, -1).astype(jnp.float32)).astype(x.dtype)


if __name__ == "__main__":
    key = jax.random.PRNGKey(0)
    k1, k2, k3 = jax.random.split(key, 3)

    # --- Test 1: spec-scale shapes (batch=8, in=32, hid=32, out=8). Exercises
    #     feature padding, full-dim single batch tile, resident (Buffered(1)) weights.
    B, IN, HID, OUT = 8, 32, 32, 8
    x = jax.random.normal(k1, (B, IN), jnp.float32)
    w1, b1, w2, b2 = init_params(k2, IN, HID, OUT)
    params, meta = prepare_params(w1, b1, w2, b2)
    out = readout_network(x, *params, out_size=meta["out_size"],
                          hid_tile=meta["hid_tile"])
    out = jax.block_until_ready(out)
    assert out.shape == (B, OUT), out.shape
    ref16 = readout_ref(x, w1, b1, w2, b2, jnp.bfloat16)
    ref32 = readout_ref(x, w1, b1, w2, b2, jnp.float32)
    assert jnp.allclose(out, ref16, atol=5e-3, rtol=5e-3), "mismatch vs bf16 reference"
    assert jnp.allclose(out, ref32, atol=5e-2, rtol=5e-2), "mismatch vs f32 reference"

    # --- Test 2: lane-aligned input (zero-copy x path), hidden-dim tiling
    #     (grid_h=2, f32 accumulator), multiple batch tiles with a ragged boundary block.
    B2, IN2, HID2, OUT2 = 200, 128, 256, 128
    x2 = jax.random.normal(k3, (B2, IN2), jnp.float32)
    w1b, b1b, w2b, b2b = init_params(jax.random.PRNGKey(7), IN2, HID2, OUT2)
    params2, meta2 = prepare_params(w1b, b1b, w2b, b2b, max_hid_tile=128)
    out2 = readout_network(x2, *params2, out_size=meta2["out_size"],
                           hid_tile=meta2["hid_tile"], batch_tile=64)
    out2 = jax.block_until_ready(out2)
    assert out2.shape == (B2, OUT2), out2.shape
    ref16b = readout_ref(x2, w1b, b1b, w2b, b2b, jnp.bfloat16)
    ref32b = readout_ref(x2, w1b, b1b, w2b, b2b, jnp.float32)
    assert jnp.allclose(out2, ref16b, atol=5e-3, rtol=5e-3), "mismatch vs bf16 reference"
    assert jnp.allclose(out2, ref32b, atol=5e-2, rtol=5e-2), "mismatch vs f32 reference"

    print("KERNEL_OK")
</pallas_src>

<mosaic_0001>
module attributes {stable_mosaic.version = 11 : i64} {
  func.func @_readout_kernel(%arg0: i32, %arg1: i32, %arg2: memref<8x128xbf16, #tpu.memory_space<vmem>>, %arg3: memref<128x128xbf16, #tpu.memory_space<vmem>>, %arg4: memref<1x128xf32, #tpu.memory_space<vmem>>, %arg5: memref<128x128xbf16, #tpu.memory_space<vmem>>, %arg6: memref<1x128xf32, #tpu.memory_space<vmem>>, %arg7: memref<8x128xf32, #tpu.memory_space<vmem>>, %arg8: memref<8x128xf32, #tpu.memory_space<vmem>>) attributes {dimension_semantics = [#tpu.dimension_semantics<parallel>, #tpu.dimension_semantics<arbitrary>], iteration_bounds = array<i64: 1, 1>, scalar_prefetch = 0 : i64, scratch_operands = 1 : i64, tpu.core_type = #tpu.core_type<tc>, window_params = [{transform_indices = @transform_0, window_bounds = array<i64: 8, 128>}, {pipeline_mode = #tpu.pipeline_mode<synchronous>, transform_indices = @transform_1, window_bounds = array<i64: 128, 128>}, {pipeline_mode = #tpu.pipeline_mode<synchronous>, transform_indices = @transform_2, window_bounds = array<i64: 1, 128>}, {pipeline_mode = #tpu.pipeline_mode<synchronous>, transform_indices = @transform_3, window_bounds = array<i64: 128, 128>}, {pipeline_mode = #tpu.pipeline_mode<synchronous>, transform_indices = @transform_4, window_bounds = array<i64: 1, 128>}, {transform_indices = @transform_5, window_bounds = array<i64: 8, 128>}]} {
    %c0_i32 = arith.constant 0 : i32
    %0 = arith.cmpi eq, %arg1, %c0_i32 : i32
    %1 = arith.extui %0 : i1 to i32
    %c0_i32_0 = arith.constant 0 : i32
    %2 = arith.cmpi ne, %1, %c0_i32_0 : i32
    scf.if %2 {
      %cst_16 = arith.constant 0.000000e+00 : f32
      %20 = vector.broadcast %cst_16 : f32 to vector<8x128xf32>
      %c0_17 = arith.constant 0 : index
      %c0_18 = arith.constant 0 : index
      %21 = vector.load %arg8[%c0_17, %c0_18] : memref<8x128xf32, #tpu.memory_space<vmem>>, vector<8x128xf32>
      tpu.vector_store %arg8[%c0_17, %c0_18], %20 {strides = array<i32>} : memref<8x128xf32, #tpu.memory_space<vmem>>, vector<8x128xf32>,
    } else {
    }
    %c0 = arith.constant 0 : index
    %c0_1 = arith.constant 0 : index
    %3 = vector.load %arg2[%c0, %c0_1] : memref<8x128xbf16, #tpu.memory_space<vmem>>, vector<8x128xbf16>
    %c0_2 = arith.constant 0 : index
    %c0_3 = arith.constant 0 : index
    %4 = vector.load %arg3[%c0_2, %c0_3] : memref<128x128xbf16, #tpu.memory_space<vmem>>, vector<128x128xbf16>
    %cst = arith.constant dense<0.000000e+00> : vector<8x128xf32>
    %5 = tpu.matmul %3, %4, %cst {dimension_numbers = #tpu.dot_dimension_numbers<[1], [0], [0], [1], [0, 0, 1, 1], [], []>} : vector<8x128xbf16>, vector<128x128xbf16>, vector<8x128xf32> -> vector<8x128xf32>
    %c0_4 = arith.constant 0 : index
    %c0_5 = arith.constant 0 : index
    %6 = vector.load %arg4[%c0_4, %c0_5] : memref<1x128xf32, #tpu.memory_space<vmem>>, vector<1x128xf32>
    %7 = vector.broadcast %6 : vector<1x128xf32> to vector<8x128xf32>
    %8 = arith.addf %5, %7 : vector<8x128xf32>
    %cst_6 = arith.constant 0.000000e+00 : f32
    %9 = vector.broadcast %cst_6 : f32 to vector<8x128xf32>
    %10 = arith.maximumf %8, %9 : vector<8x128xf32>
    %c0_7 = arith.constant 0 : index
    %c0_8 = arith.constant 0 : index
    %11 = vector.load %arg8[%c0_7, %c0_8] : memref<8x128xf32, #tpu.memory_space<vmem>>, vector<8x128xf32>
    %12 = arith.truncf %10 : vector<8x128xf32> to vector<8x128xbf16>
    %c0_9 = arith.constant 0 : index
    %c0_10 = arith.constant 0 : index
    %13 = vector.load %arg5[%c0_9, %c0_10] : memref<128x128xbf16, #tpu.memory_space<vmem>>, vector<128x128xbf16>
    %cst_11 = arith.constant dense<0.000000e+00> : vector<8x128xf32>
    %14 = tpu.matmul %12, %13, %cst_11 {dimension_numbers = #tpu.dot_dimension_numbers<[1], [0], [0], [1], [0, 0, 1, 1], [], []>} : vector<8x128xbf16>, vector<128x128xbf16>, vector<8x128xf32> -> vector<8x128xf32>
    %15 = arith.addf %11, %14 : vector<8x128xf32>
    %c0_12 = arith.constant 0 : index
    %c0_13 = arith.constant 0 : index
    %16 = vector.load %arg8[%c0_12, %c0_13] : memref<8x128xf32, #tpu.memory_space<vmem>>, vector<8x128xf32>
    tpu.vector_store %arg8[%c0_12, %c0_13], %15 {strides = array<i32>} : memref<8x128xf32, #tpu.memory_space<vmem>>, vector<8x128xf32>,
    %c0_i32_14 = arith.constant 0 : i32
    %17 = arith.cmpi eq, %arg1, %c0_i32_14 : i32
    %18 = arith.extui %17 : i1 to i32
    %c0_i32_15 = arith.constant 0 : i32
    %19 = arith.cmpi ne, %18, %c0_i32_15 : i32
    scf.if %19 {
      %c0_16 = arith.constant 0 : index
      %c0_17 = arith.constant 0 : index
      %20 = vector.load %arg8[%c0_16, %c0_17] : memref<8x128xf32, #tpu.memory_space<vmem>>, vector<8x128xf32>
      %c0_18 = arith.constant 0 : index
      %c0_19 = arith.constant 0 : index
      %21 = vector.load %arg6[%c0_18, %c0_19] : memref<1x128xf32, #tpu.memory_space<vmem>>, vector<1x128xf32>
      %22 = vector.broadcast %21 : vector<1x128xf32> to vector<8x128xf32>
      %23 = arith.addf %20, %22 : vector<8x128xf32>
      %c0_20 = arith.constant 0 : index
      %c0_21 = arith.constant 0 : index
      %24 = vector.load %arg7[%c0_20, %c0_21] : memref<8x128xf32, #tpu.memory_space<vmem>>, vector<8x128xf32>
      tpu.vector_store %arg7[%c0_20, %c0_21], %23 {strides = array<i32>} : memref<8x128xf32, #tpu.memory_space<vmem>>, vector<8x128xf32>,
    } else {
    }
    return
  }
  func.func @transform_0(%arg0: i32, %arg1: i32) -> (i32, i32) {
    %c0_i32 = arith.constant 0 : i32
    %c0_i32_0 = arith.constant 0 : i32
    return %arg0, %c0_i32 : i32, i32
  }
  func.func @transform_1(%arg0: i32, %arg1: i32) -> (i32, i32) {
    %c0_i32 = arith.constant 0 : i32
    %c0_i32_0 = arith.constant 0 : i32
    return %c0_i32, %arg1 : i32, i32
  }
  func.func @transform_2(%arg0: i32, %arg1: i32) -> (i32, i32) {
    %c0_i32 = arith.constant 0 : i32
    %c0_i32_0 = arith.constant 0 : i32
    return %c0_i32, %arg1 : i32, i32
  }
  func.func @transform_3(%arg0: i32, %arg1: i32) -> (i32, i32) {
    %c0_i32 = arith.constant 0 : i32
    %c0_i32_0 = arith.constant 0 : i32
    return %arg1, %c0_i32 : i32, i32
  }
  func.func @transform_4(%arg0: i32, %arg1: i32) -> (i32, i32) {
    %c0_i32 = arith.constant 0 : i32
    %c0_i32_0 = arith.constant 0 : i32
    %c0_i32_1 = arith.constant 0 : i32
    return %c0_i32, %c0_i32_0 : i32, i32
  }
  func.func @transform_5(%arg0: i32, %arg1: i32) -> (i32, i32) {
    %c0_i32 = arith.constant 0 : i32
    %c0_i32_0 = arith.constant 0 : i32
    return %arg0, %c0_i32 : i32, i32
  }
}

</mosaic_0001>

<bundles_post_ra>
// kernel: readout_network.1
= control target key start
LH: loop header
LB: loop body
LE: loop exit
PB: predicated region body
PF: predicated region fallthrough
CT: control target
= control target key end

     0   :  { %10 = vsyncpa [#allocation4], 0  ;;  %s468_s0 = inlined_call_operand.vmem [shape: bf16[8,128], index: 0, kind: input, shape index: {}]   ;;  %s469_s1 = inlined_call_operand.hbm [shape: bf16[128,128], index: 1, kind: input, shape index: {}]   ;;  %s470_s2 = inlined_call_operand.vmem [shape: f32[1,128], index: 2, kind: input, shape index: {}]   ;;  %s471_s3 = inlined_call_operand.hbm [shape: bf16[128,128], index: 3, kind: input, shape index: {}]   ;;  %s472_s4 = inlined_call_operand.vmem [shape: f32[1,128], index: 4, kind: input, shape index: {}]   ;;  %s473_s5 = inlined_call_operand.hbm [shape: f32[8,128], index: 5, kind: output, shape index: {}]  }
   0x1   :  { %11 = vsyncpa [#allocation7], 0 }
   0x2   :  { %12 = vsyncpa [#allocation5], 0  ;;  %s19_s20 = sshll.u32 %s469_s1, 4  ;;  %s415_s21 = smov [#allocation3]   ;;  %s20_s20 = int_to_ptr.hbm [resolvable:$true] %s19_s20 }
   0x3   :  { %s21_s22 = sshll.u32 %s415_s21, 4  ;;  %s34_s25 = sshll.u32 %s471_s3, 4  ;;  %s22_s22 = int_to_ptr.vmem [resolvable:$true] %s21_s22  ;;  %s35_s25 = int_to_ptr.hbm [resolvable:$true] %s34_s25 }
   0x4   :  { %s416_s26 = smov 64   ;;  %s417_s27 = smov 4  }
   0x5   :  { %27 = dma.hbm_to_vmem [thread:$0]  %s20_s20, 1024, %s22_s22, [#allocation4], %s416_s26, %s416_s26, %s417_s27  }
   0x6   :  { %s418_s28 = smov [#allocation6]  }
   0x7   :  { %s36_s29 = sshll.u32 %s418_s28, 4  ;;  %s37_s29 = int_to_ptr.vmem [resolvable:$true] %s36_s29 }
   0x8   :  { %42 = dma.hbm_to_vmem [thread:$0]  %s35_s25, 1024, %s37_s29, [#allocation7], %s416_s26, %s416_s26, %s417_s27  }
   0x9   :  { %409 = dma.done.wait [#allocation4], 1024  }
   0xa   :  { %410 = vsyncadd [#allocation4], 4294966272 }
   0xb   :  { %411 = dma.done.wait [#allocation7], 1024  }
   0xc   :  { %412 = vsyncadd [#allocation7], 4294966272  ;;  %v321_v0 = vld [vmem:[#allocation3 + $0x38] sm:$0xff]  ;;  %v320_v1 = vld [vmem:[#allocation3 + $0x30] sm:$0xff]  ;;  %s239_s12 = sshll.u32 %s473_s5, 4  ;;  %s240_s12 = int_to_ptr.hbm [resolvable:$true] %s239_s12 }
   0xd   :  { %127 = vmatpush.bf16.msra.mxu0 %v321_v0  ;;  %v329_v2 = vld [vmem:[#allocation6 + $0x38] sm:$0xff]  ;;  %v328_v3 = vld [vmem:[#allocation6 + $0x30] sm:$0xff]  ;;  %v319_v4 = vld [vmem:[#allocation3 + $0x28] sm:$0xff] }
   0xe   :  { %207 = vmatpush.bf16.msra.mxu1 %v329_v2  ;;  %v327_v5 = vld [vmem:[#allocation6 + $0x28] sm:$0xff]  ;;  %v318_v6 = vld [vmem:[#allocation3 + $0x20] sm:$0xff]  ;;  %v317_v8 = vld [vmem:[#allocation3 + $0x18] sm:$0xff] }
   0xf   :  { %v326_v7 = vld [vmem:[#allocation6 + $0x20] sm:$0xff]  ;;  %v325_v9 = vld [vmem:[#allocation6 + $0x18] sm:$0xff]  ;;  %v316_v10 = vld [vmem:[#allocation3 + $0x10] sm:$0xff] }
  0x10   :  { %v324_v11 = vld [vmem:[#allocation6 + $0x10] sm:$0xff]  ;;  %v315_v12 = vld [vmem:[#allocation3 + $0x8] sm:$0xff]  ;;  %v314_v13 = vld [vmem:[#allocation3] sm:$0xff] }
  0x11   :  { %128 = vmatpush.bf16.msra.mxu0 %v320_v1  ;;  %v58_v14 = vld [vmem:[%s468_s0] sm:$0xf]  ;;  %v323_v15 = vld [vmem:[#allocation6 + $0x8] sm:$0xff]  ;;  %s419_s0 = smov [#allocation8]  }
  0x12   :  { %208 = vmatpush.bf16.msra.mxu1 %v328_v3  ;;  %v322_v16 = vld [vmem:[#allocation6] sm:$0xff]  ;;  %s237_s9 = sshll.u32 %s419_s0, 4  ;;  %s238_s9 = int_to_ptr.vmem [resolvable:$true] %s237_s9 }
  0x13   :  { %v335_v17 = vld [vmem:[%s470_s2] ss:$0 sm:$0xff] }
  0x14   :  { %v336_v23 = vld [vmem:[%s472_s4] ss:$0 sm:$0xff] }
  0x15   :  { %129 = vmatpush.bf16.msra.mxu0 %v319_v4 }
  0x16   :  { %209 = vmatpush.bf16.msra.mxu1 %v327_v5 }
  0x19   :  { %130 = vmatpush.bf16.msra.mxu0 %v318_v6 }
  0x1a   :  { %210 = vmatpush.bf16.msra.mxu1 %v326_v7 }
  0x1d   :  { %131 = vmatpush.bf16.msra.mxu0 %v317_v8 }
  0x1e   :  { %211 = vmatpush.bf16.msra.mxu1 %v325_v9 }
  0x21   :  { %132 = vmatpush.bf16.msra.mxu0 %v316_v10 }
  0x22   :  { %212 = vmatpush.bf16.msra.mxu1 %v324_v11 }
  0x25   :  { %133 = vmatpush.bf16.msra.mxu0 %v315_v12 }
  0x26   :  { %213 = vmatpush.bf16.msra.mxu1 %v323_v15 }
  0x29   :  { %134 = vmatpush.bf16.msra.mxu0 %v314_v13 }
  0x2a   :  { %214 = vmatpush.bf16.msra.mxu1 %v322_v16 }
  0x2c   :  { %135 = vmatmul.bf16.vlgmr.msra.gmra.mxu0 %v58_v14 }
  0xa9   :  { %v136_v18 = vpop.f32.mrf.mxu0 }
  0xaa   :  { %v137_v19 = vadd.f32 %v335_v17, %v136_v18 }
  0xac   :  { %v140_v20 = vmax.f32 %v137_v19, 0.0 }
  0xae   :  { %v142_v21 = vpack.c.bf16 %v140_v20, %v140_v20 }
  0xb0   :  { %215 = vmatmul.bf16.vlgmr.msra.gmra.mxu1 %v142_v21 }
  0xb1   :  { %v138_v22 = vpop.f32.mrf.mxu0 }
 0x12d   :  { %v216_v24 = vpop.f32.mrf.mxu1 }
 0x12e   :  { %v230_v25 = vadd.f32 %v336_v23, %v216_v24 }
 0x130   :  { %231 = vst [vmem:[#allocation8] sm:$0xff] %v230_v25 }
 0x131   :  { %242 = dma.vmem_to_hbm [thread:$0]  %s238_s9, 128, %s240_s12, [#allocation5]  }
 0x135   :  { %v218_v26 = vpop.f32.mrf.mxu1 }
 0x136   :  { %413 = dma.done.wait [#allocation5], 128  }
 0x137   :  { %414 = vsyncadd [#allocation5], 4294967168 }
 0x138   :  { %247 = vsyncpa [#allocation4], 1 }
 0x139   :  { %248 = vsyncpa [#allocation7], 1 }
 0x13a   :  { %249 = vsyncpa [#allocation5], 1 }

</bundles_post_ra>
